<compile_context>
chip_gen: v6e
topology: v6e:2x2x1
jax: 0.10.0
libtpu: 0.0.40
codegen_flags: <defaults>
</compile_context>

<pallas_src>
import jax
import jax.numpy as jnp
from jax.experimental import pallas as pl
from jax.experimental.pallas import tpu as pltpu


def channel_attention_kernel(x_ref, w1_ref, w2_ref, o_ref):
    # x_ref / o_ref: (Bt, C, S) in native dtype
    # w1_ref: (Cr, C) f32 (resident), w2_ref: (C, Cr) f32 (resident)
    w1 = w1_ref[...]
    w2 = w2_ref[...]
    bt = x_ref.shape[0]

    # Static unroll over the (small, <= 8) per-block batch.  Each image's
    # (C, S) slice is re-read from VMEM at every use (mean / max / multiply)
    # instead of being bound once — VMEM re-loads are cheap (3 vld slots/cycle)
    # and this avoids trying to keep the whole tile live in vregs.
    for b in range(bt):
        # AdaptiveAvgPool2d(1) / AdaptiveMaxPool2d(1): cross-lane reduce over S.
        # Only the pooled (C, 1) vectors are materialized in f32.
        avg = jnp.mean(x_ref[b], axis=-1, keepdims=True, dtype=jnp.float32)   # (C, 1)
        mx = jnp.max(x_ref[b], axis=-1, keepdims=True).astype(jnp.float32)    # (C, 1)

        # Shared bias-free MLP: fc1 -> ReLU for both pooled vectors, one fc2.
        h = (jnp.maximum(jnp.dot(w1, avg, preferred_element_type=jnp.float32), 0.0)
             + jnp.maximum(jnp.dot(w1, mx, preferred_element_type=jnp.float32), 0.0))   # (Cr, 1)
        gate = jax.nn.sigmoid(
            jnp.dot(w2, h, preferred_element_type=jnp.float32))                         # (C, 1)

        # out = x * sigmoid(...): per-channel gate broadcast over lanes,
        # multiply in the input's native dtype (no full-tile f32 upcast).
        o_ref[b] = x_ref[b] * gate.astype(o_ref.dtype)


def _vmem_limit_bytes():
    """Generation-aware VMEM budget: ~3/4 of physical, capped at 96 MiB.

    v5e/v6e (128 MiB physical) -> 96 MiB; v7x (64 MiB physical) -> 48 MiB.
    """
    cap = None
    try:
        cap = getattr(pltpu.get_tpu_info(), "vmem_capacity_bytes", None)
    except Exception:
        cap = None
    if not cap:
        cap = 64 * 1024 * 1024   # conservative (v7x-sized) fallback
    return int(min(cap * 3 // 4, 96 * 1024 * 1024))


def channel_attention(x_nchw, w1, w2, *,
                      target_block_bytes=4 * 1024 * 1024, max_batch_tile=8):
    """x_nchw: (N, C, H, W); w1: (Cr, C) from fc1 (Cr, C, 1, 1); w2: (C, Cr)."""
    N, C, H, W = x_nchw.shape
    Cr = w1.shape[0]
    S = H * W

    # Free reshape only — no transposes.  Weight casts hoisted out of the
    # kernel so they run once, not on every grid step.
    x_ncs = x_nchw.reshape(N, C, S)
    w1 = w1.astype(jnp.float32)
    w2 = w2.astype(jnp.float32)

    # --- block sizing: batch several images per grid step so each block is a
    # few MiB (large-block DMA regime), capped by max_batch_tile (static unroll
    # size) and reduced to a divisor of N.
    bytes_per_image = C * S * x_ncs.dtype.itemsize
    bt = max(1, min(N, max_batch_tile,
                    max(1, target_block_bytes // max(bytes_per_image, 1))))
    while N % bt:
        bt -= 1
    # TODO(synk): for very large single-image C*S (e.g. 64x224^2 f32 ~= 12.8 MiB
    # per block, ~51 MiB with double buffering) on v7x's 64 MiB VMEM, split S
    # across grid steps with a two-phase (gate-compute, then S-tiled gate-apply)
    # pipeline instead of one block per image.
    # TODO(synk): late CNN stages (S <= 49, C >= 512) would prefer a (1, S, C)
    # layout with C on lanes; the (C, S) layout here targets early stages where
    # S is large and lane-dense.

    out_ncs = pl.pallas_call(
        channel_attention_kernel,
        out_shape=jax.ShapeDtypeStruct((N, C, S), x_ncs.dtype),
        grid_spec=pltpu.PrefetchScalarGridSpec(
            num_scalar_prefetch=0,
            grid=(N // bt,),
            in_specs=[
                pl.BlockSpec((bt, C, S), lambda n: (n, 0, 0)),
                pl.BlockSpec((Cr, C), lambda n: (0, 0)),   # resident f32 weights
                pl.BlockSpec((C, Cr), lambda n: (0, 0)),
            ],
            out_specs=pl.BlockSpec((bt, C, S), lambda n: (n, 0, 0)),
        ),
        compiler_params=pltpu.CompilerParams(
            dimension_semantics=("parallel",),        # batch axis: megacore-shardable
            vmem_limit_bytes=_vmem_limit_bytes(),
        ),
        # Same shape/dtype, every output block fully rewritten from the same
        # block index -> safe to alias; saves an HBM allocation when x is donated.
        input_output_aliases={0: 0},
    )(x_ncs, w1, w2)

    return out_ncs.reshape(N, C, H, W)


def channel_attention_ref(x, w1, w2):
    """Pure-JAX reference mirroring the PyTorch forward (NCHW)."""
    avg = jnp.mean(x, axis=(2, 3), keepdims=True)          # (N, C, 1, 1)
    mx = jnp.max(x, axis=(2, 3), keepdims=True)            # (N, C, 1, 1)

    def mlp(p):  # p: (N, C, 1, 1)
        v = p[:, :, 0, 0]                                   # (N, C)
        h = jnp.maximum(v @ w1.T, 0.0)                      # (N, Cr)
        return (h @ w2.T)[:, :, None, None]                 # (N, C, 1, 1)

    act = jax.nn.sigmoid(mlp(avg) + mlp(mx))
    return x * act


if __name__ == "__main__":
    key = jax.random.PRNGKey(0)
    k_x, k_w1, k_w2 = jax.random.split(key, 3)

    # Shapes consistent with the module: in_planes=32, ratio=16 -> Cr=2;
    # H=W=16 so S=256 (lane-dense multiple of 128).  With batch tiling the
    # whole N=2 batch is processed in a single grid step.
    N, C, H, W = 2, 32, 16, 16
    ratio = 16
    Cr = C // ratio

    x = jax.random.normal(k_x, (N, C, H, W), dtype=jnp.float32)
    # Synthetic weights (shapes match nn.Conv2d(C, Cr, 1, bias=False) /
    # nn.Conv2d(Cr, C, 1, bias=False), squeezed to 2-D).
    w1 = jax.random.normal(k_w1, (Cr, C), dtype=jnp.float32) * 0.1
    w2 = jax.random.normal(k_w2, (C, Cr), dtype=jnp.float32) * 0.1

    out = jax.block_until_ready(channel_attention(x, w1, w2))
    ref = channel_attention_ref(x, w1, w2)

    assert out.shape == (N, C, H, W)
    assert jnp.allclose(out, ref, atol=1e-5, rtol=1e-5)

    print("KERNEL_OK")
</pallas_src>

<mosaic_0001>
module attributes {stable_mosaic.version = 11 : i64} {
  func.func @channel_attention_kernel(%arg0: i32, %arg1: memref<2x32x256xf32, #tpu.memory_space<vmem>>, %arg2: memref<2x32xf32, #tpu.memory_space<vmem>>, %arg3: memref<32x2xf32, #tpu.memory_space<vmem>>, %arg4: memref<2x32x256xf32, #tpu.memory_space<vmem>>) attributes {dimension_semantics = [#tpu.dimension_semantics<parallel>], iteration_bounds = array<i64: 1>, scalar_prefetch = 0 : i64, scratch_operands = 0 : i64, tpu.core_type = #tpu.core_type<tc>, window_params = [{transform_indices = @transform_0, window_bounds = array<i64: 2, 32, 256>}, {pipeline_mode = #tpu.pipeline_mode<synchronous>, transform_indices = @transform_1, window_bounds = array<i64: 2, 32>}, {pipeline_mode = #tpu.pipeline_mode<synchronous>, transform_indices = @transform_2, window_bounds = array<i64: 32, 2>}, {transform_indices = @transform_3, window_bounds = array<i64: 2, 32, 256>}]} {
    %c0 = arith.constant 0 : index
    %c0_0 = arith.constant 0 : index
    %0 = vector.load %arg2[%c0, %c0_0] : memref<2x32xf32, #tpu.memory_space<vmem>>, vector<2x32xf32>
    %c0_1 = arith.constant 0 : index
    %c0_2 = arith.constant 0 : index
    %1 = vector.load %arg3[%c0_1, %c0_2] : memref<32x2xf32, #tpu.memory_space<vmem>>, vector<32x2xf32>
    %c0_3 = arith.constant 0 : index
    %c0_4 = arith.constant 0 : index
    %c0_5 = arith.constant 0 : index
    %2 = vector.load %arg1[%c0_3, %c0_4, %c0_5] : memref<2x32x256xf32, #tpu.memory_space<vmem>>, vector<1x32x256xf32>
    %3 = vector.shape_cast %2 : vector<1x32x256xf32> to vector<32x256xf32>
    %cst = arith.constant dense<0.000000e+00> : vector<32xf32>
    %4 = vector.multi_reduction <add>, %3, %cst [1] : vector<32x256xf32> to vector<32xf32>
    %5 = vector.shape_cast %4 : vector<32xf32> to vector<32x1xf32>
    %cst_6 = arith.constant 2.560000e+02 : f32
    %6 = vector.broadcast %cst_6 : f32 to vector<32x1xf32>
    %7 = arith.divf %5, %6 : vector<32x1xf32>
    %c0_7 = arith.constant 0 : index
    %c0_8 = arith.constant 0 : index
    %c0_9 = arith.constant 0 : index
    %8 = vector.load %arg1[%c0_7, %c0_8, %c0_9] : memref<2x32x256xf32, #tpu.memory_space<vmem>>, vector<1x32x256xf32>
    %9 = vector.shape_cast %8 : vector<1x32x256xf32> to vector<32x256xf32>
    %cst_10 = arith.constant dense<0xFF800000> : vector<32xf32>
    %10 = vector.multi_reduction <maximumf>, %9, %cst_10 [1] : vector<32x256xf32> to vector<32xf32>
    %11 = vector.shape_cast %10 : vector<32xf32> to vector<32x1xf32>
    %cst_11 = arith.constant dense<0.000000e+00> : vector<2x1xf32>
    %12 = tpu.matmul %0, %7, %cst_11 {dimension_numbers = #tpu.dot_dimension_numbers<[1], [0], [0], [1], [0, 0, 1, 1], [], []>} : vector<2x32xf32>, vector<32x1xf32>, vector<2x1xf32> -> vector<2x1xf32>
    %cst_12 = arith.constant 0.000000e+00 : f32
    %13 = vector.broadcast %cst_12 : f32 to vector<2x1xf32>
    %14 = arith.maximumf %12, %13 : vector<2x1xf32>
    %cst_13 = arith.constant dense<0.000000e+00> : vector<2x1xf32>
    %15 = tpu.matmul %0, %11, %cst_13 {dimension_numbers = #tpu.dot_dimension_numbers<[1], [0], [0], [1], [0, 0, 1, 1], [], []>} : vector<2x32xf32>, vector<32x1xf32>, vector<2x1xf32> -> vector<2x1xf32>
    %cst_14 = arith.constant 0.000000e+00 : f32
    %16 = vector.broadcast %cst_14 : f32 to vector<2x1xf32>
    %17 = arith.maximumf %15, %16 : vector<2x1xf32>
    %18 = arith.addf %14, %17 : vector<2x1xf32>
    %cst_15 = arith.constant dense<0.000000e+00> : vector<32x1xf32>
    %19 = tpu.matmul %1, %18, %cst_15 {dimension_numbers = #tpu.dot_dimension_numbers<[1], [0], [0], [1], [0, 0, 1, 1], [], []>} : vector<32x2xf32>, vector<2x1xf32>, vector<32x1xf32> -> vector<32x1xf32>
    %20 = arith.negf %19 : vector<32x1xf32>
    %21 = math.exp %20 : vector<32x1xf32>
    %cst_16 = arith.constant 1.000000e+00 : f32
    %22 = vector.broadcast %cst_16 : f32 to vector<32x1xf32>
    %23 = arith.addf %22, %21 : vector<32x1xf32>
    %24 = arith.divf %22, %23 : vector<32x1xf32>
    %c0_17 = arith.constant 0 : index
    %c0_18 = arith.constant 0 : index
    %c0_19 = arith.constant 0 : index
    %25 = vector.load %arg1[%c0_17, %c0_18, %c0_19] : memref<2x32x256xf32, #tpu.memory_space<vmem>>, vector<1x32x256xf32>
    %26 = vector.shape_cast %25 : vector<1x32x256xf32> to vector<32x256xf32>
    %27 = vector.broadcast %24 : vector<32x1xf32> to vector<32x256xf32>
    %28 = arith.mulf %26, %27 : vector<32x256xf32>
    %c0_20 = arith.constant 0 : index
    %c0_21 = arith.constant 0 : index
    %c0_22 = arith.constant 0 : index
    %29 = vector.load %arg4[%c0_20, %c0_21, %c0_22] : memref<2x32x256xf32, #tpu.memory_space<vmem>>, vector<1x32x256xf32>
    %30 = vector.shape_cast %29 : vector<1x32x256xf32> to vector<32x256xf32>
    %31 = vector.shape_cast %28 : vector<32x256xf32> to vector<1x32x256xf32>
    tpu.vector_store %arg4[%c0_20, %c0_21, %c0_22], %31 {strides = array<i32>} : memref<2x32x256xf32, #tpu.memory_space<vmem>>, vector<1x32x256xf32>,
    %c1 = arith.constant 1 : index
    %c0_23 = arith.constant 0 : index
    %c0_24 = arith.constant 0 : index
    %32 = vector.load %arg1[%c1, %c0_23, %c0_24] : memref<2x32x256xf32, #tpu.memory_space<vmem>>, vector<1x32x256xf32>
    %33 = vector.shape_cast %32 : vector<1x32x256xf32> to vector<32x256xf32>
    %cst_25 = arith.constant dense<0.000000e+00> : vector<32xf32>
    %34 = vector.multi_reduction <add>, %33, %cst_25 [1] : vector<32x256xf32> to vector<32xf32>
    %35 = vector.shape_cast %34 : vector<32xf32> to vector<32x1xf32>
    %cst_26 = arith.constant 2.560000e+02 : f32
    %36 = vector.broadcast %cst_26 : f32 to vector<32x1xf32>
    %37 = arith.divf %35, %36 : vector<32x1xf32>
    %c1_27 = arith.constant 1 : index
    %c0_28 = arith.constant 0 : index
    %c0_29 = arith.constant 0 : index
    %38 = vector.load %arg1[%c1_27, %c0_28, %c0_29] : memref<2x32x256xf32, #tpu.memory_space<vmem>>, vector<1x32x256xf32>
    %39 = vector.shape_cast %38 : vector<1x32x256xf32> to vector<32x256xf32>
    %cst_30 = arith.constant dense<0xFF800000> : vector<32xf32>
    %40 = vector.multi_reduction <maximumf>, %39, %cst_30 [1] : vector<32x256xf32> to vector<32xf32>
    %41 = vector.shape_cast %40 : vector<32xf32> to vector<32x1xf32>
    %cst_31 = arith.constant dense<0.000000e+00> : vector<2x1xf32>
    %42 = tpu.matmul %0, %37, %cst_31 {dimension_numbers = #tpu.dot_dimension_numbers<[1], [0], [0], [1], [0, 0, 1, 1], [], []>} : vector<2x32xf32>, vector<32x1xf32>, vector<2x1xf32> -> vector<2x1xf32>
    %cst_32 = arith.constant 0.000000e+00 : f32
    %43 = vector.broadcast %cst_32 : f32 to vector<2x1xf32>
    %44 = arith.maximumf %42, %43 : vector<2x1xf32>
    %cst_33 = arith.constant dense<0.000000e+00> : vector<2x1xf32>
    %45 = tpu.matmul %0, %41, %cst_33 {dimension_numbers = #tpu.dot_dimension_numbers<[1], [0], [0], [1], [0, 0, 1, 1], [], []>} : vector<2x32xf32>, vector<32x1xf32>, vector<2x1xf32> -> vector<2x1xf32>
    %cst_34 = arith.constant 0.000000e+00 : f32
    %46 = vector.broadcast %cst_34 : f32 to vector<2x1xf32>
    %47 = arith.maximumf %45, %46 : vector<2x1xf32>
    %48 = arith.addf %44, %47 : vector<2x1xf32>
    %cst_35 = arith.constant dense<0.000000e+00> : vector<32x1xf32>
    %49 = tpu.matmul %1, %48, %cst_35 {dimension_numbers = #tpu.dot_dimension_numbers<[1], [0], [0], [1], [0, 0, 1, 1], [], []>} : vector<32x2xf32>, vector<2x1xf32>, vector<32x1xf32> -> vector<32x1xf32>
    %50 = arith.negf %49 : vector<32x1xf32>
    %51 = math.exp %50 : vector<32x1xf32>
    %cst_36 = arith.constant 1.000000e+00 : f32
    %52 = vector.broadcast %cst_36 : f32 to vector<32x1xf32>
    %53 = arith.addf %52, %51 : vector<32x1xf32>
    %54 = arith.divf %52, %53 : vector<32x1xf32>
    %c1_37 = arith.constant 1 : index
    %c0_38 = arith.constant 0 : index
    %c0_39 = arith.constant 0 : index
    %55 = vector.load %arg1[%c1_37, %c0_38, %c0_39] : memref<2x32x256xf32, #tpu.memory_space<vmem>>, vector<1x32x256xf32>
    %56 = vector.shape_cast %55 : vector<1x32x256xf32> to vector<32x256xf32>
    %57 = vector.broadcast %54 : vector<32x1xf32> to vector<32x256xf32>
    %58 = arith.mulf %56, %57 : vector<32x256xf32>
    %c1_40 = arith.constant 1 : index
    %c0_41 = arith.constant 0 : index
    %c0_42 = arith.constant 0 : index
    %59 = vector.load %arg4[%c1_40, %c0_41, %c0_42] : memref<2x32x256xf32, #tpu.memory_space<vmem>>, vector<1x32x256xf32>
    %60 = vector.shape_cast %59 : vector<1x32x256xf32> to vector<32x256xf32>
    %61 = vector.shape_cast %58 : vector<32x256xf32> to vector<1x32x256xf32>
    tpu.vector_store %arg4[%c1_40, %c0_41, %c0_42], %61 {strides = array<i32>} : memref<2x32x256xf32, #tpu.memory_space<vmem>>, vector<1x32x256xf32>,
    return
  }
  func.func @transform_0(%arg0: i32) -> (i32, i32, i32) {
    %c0_i32 = arith.constant 0 : i32
    %c0_i32_0 = arith.constant 0 : i32
    %c0_i32_1 = arith.constant 0 : i32
    return %arg0, %c0_i32, %c0_i32_0 : i32, i32, i32
  }
  func.func @transform_1(%arg0: i32) -> (i32, i32) {
    %c0_i32 = arith.constant 0 : i32
    %c0_i32_0 = arith.constant 0 : i32
    %c0_i32_1 = arith.constant 0 : i32
    return %c0_i32, %c0_i32_0 : i32, i32
  }
  func.func @transform_2(%arg0: i32) -> (i32, i32) {
    %c0_i32 = arith.constant 0 : i32
    %c0_i32_0 = arith.constant 0 : i32
    %c0_i32_1 = arith.constant 0 : i32
    return %c0_i32, %c0_i32_0 : i32, i32
  }
  func.func @transform_3(%arg0: i32) -> (i32, i32, i32) {
    %c0_i32 = arith.constant 0 : i32
    %c0_i32_0 = arith.constant 0 : i32
    %c0_i32_1 = arith.constant 0 : i32
    return %arg0, %c0_i32, %c0_i32_0 : i32, i32, i32
  }
}

</mosaic_0001>

<bundles_post_ra>
// kernel: tpu_custom_call.1
= control target key start
LH: loop header
LB: loop body
LE: loop exit
PB: predicated region body
PF: predicated region fallthrough
CT: control target
= control target key end

     0   :  { %8 = vsyncpa [#allocation3], 0  ;;  %s1103_s0 = inlined_call_operand.hbm [shape: f32[2,32,256], index: 0, kind: input, shape index: {}, may-alias: {0,3}]   ;;  %s1104_s1 = inlined_call_operand.vmem [shape: f32[2,32], index: 1, kind: input, shape index: {}]   ;;  %s1105_s2 = inlined_call_operand.vmem [shape: f32[32,2], index: 2, kind: input, shape index: {}]   ;;  %s1106_s3 = inlined_call_operand.hbm [shape: f32[2,32,256], index: 3, kind: output, shape index: {}, may-alias: {0,3}]  }
   0x1   :  { %9 = vsyncpa [#allocation4], 0  ;;  %s923_s12 = smov [#allocation2]  }
   0x2   :  { %s15_s13 = sshll.u32 %s923_s12, 4  ;;  %s16_s13 = int_to_ptr.vmem [resolvable:$true] %s15_s13 }
   0x3   :  { %s887_s14 = scalar_lea.vmem %s16_s13, 2048  ;;  %p892_p1 = scmp.lt.s32.totalorder %s16_s13, %s16_s13 }
   0x4   :  { %p888_p0 = scmp.ne.s32.totalorder %s16_s13, %s887_s14  ;;  %p893_p2 = scmp.lt.s32.totalorder %s887_s14, %s887_s14 }
   0x6   :  { %p894_p3 = por %p893_p2, %p892_p1 }
   0x8   :  { %p895_p4 = pnand %p894_p3, %p888_p0 }
   0xa   :  { %898 = shalt.err (!%p895_p4)
}
   0xb   :  { %s924_s15 = smov 256   ;;  %s925_s16 = smov 16  }
   0xc   :  { %21 = dma.hbm_to_vmem [thread:$0]  %s1103_s0, 2048, %s16_s13, [#allocation3], %s924_s15, %s924_s15, %s925_s16  }
   0xd   :  { %919 = dma.done.wait [#allocation3], 2048  }
   0xe   :  { %920 = vsyncadd [#allocation3], 4294965248  ;;  %v956_v0 = vld [vmem:[#allocation2 + $0x30] sm:$0xff]  ;;  %v958_v1 = vld [vmem:[#allocation2 + $0x38] sm:$0xff]  ;;  %v926_v16 = vmov 0.0   ;;  %vm927_vm0 = vmmov 0  }
   0xf   :  { %v960_v2 = vld [vmem:[#allocation2 + $0x20] sm:$0xff]  ;;  %v51_v3 = vadd.f32 %v958_v1, %v956_v0  ;;  %v68_v4 = vmax.f32 %v956_v0, %v958_v1  ;;  %v966_v5 = vld [vmem:[#allocation2 + $0x28] sm:$0xff]  ;;  %v968_v6 = vld [vmem:[#allocation2 + $0x10] sm:$0xff]  ;;  %778 = vmatprep.subr.mxu0 %v926_v16  ;;  %789 = vmatprep.subr.mxu1 %v926_v16  ;;  %vm71_vm1 = vcmask 261120   ;;  %vm218_vm2 = vcmask 15360  }
  0x10   :  { %v970_v7 = vld [vmem:[#allocation2 + $0x18] sm:$0xff]  ;;  %v48_v8 = vadd.f32 %v966_v5, %v960_v2  ;;  %v976_v10 = vld [vmem:[#allocation2] sm:$0xff]  ;;  %v978_v11 = vld [vmem:[#allocation2 + $0x8] sm:$0xff]  ;;  %v65_v12 = vmax.f32 %v960_v2, %v966_v5  ;;  %786 = vmatprep.mubr.msk.f32.mxu0 %vm927_vm0, %v926_v16  ;;  %797 = vmatprep.mubr.msk.f32.mxu1 %vm927_vm0, %v926_v16  ;;  %vm231_vm3 = vcmask 1041408  }
  0x11   :  { %52 = vadd.xlane.f32.xlu0 %v51_v3  ;;  %69 = vmax.xlane.f32.xlu1 %v68_v4  ;;  %v45_v9 = vadd.f32 %v970_v7, %v968_v6  ;;  %v42_v13 = vadd.f32 %v978_v11, %v976_v10  ;;  %v62_v14 = vmax.f32 %v968_v6, %v970_v7  ;;  %v994_v17 = vld [vmem:[#allocation2 + $0x70] sm:$0xff]  ;;  %v996_v18 = vld [vmem:[#allocation2 + $0x78] sm:$0xff]  ;;  %v998_v19 = vld [vmem:[#allocation2 + $0x60] sm:$0xff] }
  0x12   :  { %v59_v15 = vmax.f32 %v976_v10, %v978_v11  ;;  %v398_v20 = vadd.f32 %v996_v18, %v994_v17  ;;  %v1002_v21 = vld [vmem:[#allocation2 + $0x68] sm:$0xff]  ;;  %v1004_v22 = vld [vmem:[#allocation2 + $0x50] sm:$0xff]  ;;  %v1006_v23 = vld [vmem:[#allocation2 + $0x58] sm:$0xff]  ;;  %v414_v25 = vmax.f32 %v994_v17, %v996_v18 }
  0x13   :  { %v395_v24 = vadd.f32 %v1002_v21, %v998_v19  ;;  %v392_v26 = vadd.f32 %v1006_v23, %v1004_v22  ;;  %v1014_v27 = vld [vmem:[#allocation2 + $0x40] sm:$0xff]  ;;  %v1016_v28 = vld [vmem:[#allocation2 + $0x48] sm:$0xff]  ;;  %v411_v29 = vmax.f32 %v998_v19, %v1002_v21  ;;  %v408_v31 = vmax.f32 %v1004_v22, %v1006_v23  ;;  %v32_v4 = vld [vmem:[%s1105_s2 + $0x10] sm:$0xff] }
  0x14   :  { %v389_v30 = vadd.f32 %v1016_v28, %v1014_v27  ;;  %v405_v32 = vmax.f32 %v1014_v27, %v1016_v28  ;;  %v1032_v43 = vld [vmem:[%s1104_s1] sm:$0x3]  ;;  %v31_v3 = vld [vmem:[%s1105_s2 + $0x8] sm:$0xff] }
  0x15   :  { %49 = vadd.xlane.f32.xlu0 %v48_v8  ;;  %46 = vadd.xlane.f32.xlu1 %v45_v9  ;;  %v30_v51 = vld [vmem:[%s1105_s2] sm:$0xff]  ;;  %v33_v8 = vld [vmem:[%s1105_s2 + $0x18] sm:$0xff]  ;;  %s929_s2 = smov [#allocation5]  }
  0x16   :  { %s714_s27 = sshll.u32 %s929_s2, 4  ;;  %s715_s27 = int_to_ptr.vmem [resolvable:$true] %s714_s27 }
  0x17   :  { %s899_s28 = scalar_lea.vmem %s715_s27, 2048  ;;  %p904_p6 = scmp.lt.s32.totalorder %s715_s27, %s715_s27 }
  0x18   :  { %p900_p5 = scmp.ne.s32.totalorder %s715_s27, %s899_s28  ;;  %p905_p7 = scmp.lt.s32.totalorder %s899_s28, %s899_s28 }
  0x19   :  { %66 = vmax.xlane.f32.xlu0 %v65_v12  ;;  %43 = vadd.xlane.f32.xlu1 %v42_v13 }
  0x1a   :  { %p906_p8 = por %p905_p7, %p904_p6 }
  0x1c   :  { %p907_p9 = pnand %p906_p8, %p900_p5 }
  0x1d   :  { %63 = vmax.xlane.f32.xlu0 %v62_v14  ;;  %60 = vmax.xlane.f32.xlu1 %v59_v15  ;;  %v928_v15 = vmov 0  }
  0x1e   :  { %846 = vset.pattern.permute.xlu1 %v928_v15  ;;  %845 = vset.pattern.permute.xlu0 %v928_v15 }
  0x21   :  { %399 = vadd.xlane.f32.xlu0 %v398_v20  ;;  %396 = vadd.xlane.f32.xlu1 %v395_v24 }
  0x25   :  { %415 = vmax.xlane.f32.xlu0 %v414_v25  ;;  %393 = vadd.xlane.f32.xlu1 %v392_v26 }
  0x29   :  { %412 = vmax.xlane.f32.xlu0 %v411_v29  ;;  %390 = vadd.xlane.f32.xlu1 %v389_v30 }
  0x2d   :  { %409 = vmax.xlane.f32.xlu0 %v408_v31  ;;  %406 = vmax.xlane.f32.xlu1 %v405_v32 }
  0x9a   :  { %v53_v33 = vpop.xlane.xlu0 %52  ;;  %v70_v34 = vpop.xlane.xlu1 %69 }
  0x9b   :  { %v58_v35 = vmul.f32 0.00390625, %v53_v33  ;;  %790 = vmatpush3.msra.mxu1 %v70_v34 }
  0x9c   :  { %791 = vmatprep.subr.mxu1 %v926_v16 }
  0x9d   :  { %779 = vmatpush3.msra.mxu0 %v58_v35 }
  0x9e   :  { %v50_v36 = vpop.xlane.xlu0 %49  ;;  %780 = vmatprep.subr.mxu0 %v926_v16  ;;  %v47_v37 = vpop.xlane.xlu1 %46 }
  0x9f   :  { %v57_v38 = vmul.f32 0.00390625, %v50_v36  ;;  %v56_v39 = vmul.f32 0.00390625, %v47_v37 }
  0xa1   :  { %781 = vmatpush3.msra.mxu0 %v57_v38 }
  0xa2   :  { %782 = vmatprep.subr.mxu0 %v926_v16  ;;  %v67_v40 = vpop.xlane.xlu0 %66  ;;  %v44_v41 = vpop.xlane.xlu1 %43 }
  0xa3   :  { %783 = vmatpush3.msra.mxu0 %v56_v39  ;;  %792 = vmatpush3.msra.mxu1 %v67_v40  ;;  %v55_v42 = vmul.f32 0.00390625, %v44_v41 }
  0xa4   :  { %793 = vmatprep.subr.mxu1 %v926_v16  ;;  %784 = vmatprep.subr.mxu0 %v926_v16 }
  0xa5   :  { %785 = vmatpush3.msra.mxu0 %v55_v42 }
  0xa6   :  { %v64_v44 = vpop.xlane.xlu0 %63  ;;  %v61_v45 = vpop.xlane.xlu1 %60  ;;  %787 = vmatmul.mubr.msk.f32.vlgmr.msra.gmra.mxu0 %vm71_vm1, %v1032_v43 }
  0xa7   :  { %794 = vmatpush3.msra.mxu1 %v64_v44  ;;  %802 = vmatprep.mubr.msk.f32.mxu0 %vm218_vm2, %v30_v51 }
  0xa8   :  { %795 = vmatprep.subr.mxu1 %v926_v16 }
  0xa9   :  { %796 = vmatpush3.msra.mxu1 %v61_v45 }
  0xaa   :  { %798 = vmatmul.mubr.msk.f32.vlgmr.msra.gmra.mxu1 %vm71_vm1, %v1032_v43  ;;  %808 = vmatprep.subr.mxu1 %v926_v16  ;;  %v400_v46 = vpop.xlane.xlu0 %399  ;;  %v397_v48 = vpop.xlane.xlu1 %396 }
  0xab   :  { %816 = vmatprep.mubr.msk.f32.mxu1 %vm927_vm0, %v926_v16  ;;  %v404_v47 = vmul.f32 0.00390625, %v400_v46  ;;  %v403_v49 = vmul.f32 0.00390625, %v397_v48 }
  0xad   :  { %809 = vmatpush3.msra.mxu1 %v404_v47 }
  0xae   :  { %810 = vmatprep.subr.mxu1 %v926_v16  ;;  %v394_v50 = vpop.xlane.xlu1 %393  ;;  %v416_v56 = vpop.xlane.xlu0 %415 }
  0xaf   :  { %811 = vmatpush3.msra.mxu1 %v403_v49  ;;  %v402_v52 = vmul.f32 0.00390625, %v394_v50 }
  0xb0   :  { %812 = vmatprep.subr.mxu1 %v926_v16 }
  0xb1   :  { %813 = vmatpush3.msra.mxu1 %v402_v52 }
  0xb2   :  { %v391_v53 = vpop.xlane.xlu1 %390  ;;  %814 = vmatprep.subr.mxu1 %v926_v16  ;;  %v413_v63 = vpop.xlane.xlu0 %412 }
  0xb3   :  { %v401_v54 = vmul.f32 0.00390625, %v391_v53 }
  0xb5   :  { %815 = vmatpush3.msra.mxu1 %v401_v54 }
  0xb6   :  { %817 = vmatmul.mubr.msk.f32.vlgmr.msra.gmra.mxu1 %vm71_vm1, %v1032_v43  ;;  %v410_v9 = vpop.xlane.xlu0 %409  ;;  %v407_v12 = vpop.xlane.xlu1 %406 }
  0xb7   :  { %832 = vmatprep.mubr.msk.f32.mxu1 %vm218_vm2, %v30_v51 }
 0x166   :  { %v141_v55 = vpop.f32.mrf.mxu0 }
 0x167   :  { %v145_v58 = vmax.f32 %v141_v55, 0.0 }
 0x168   :  { %v788_v57 = vpop.f32.mrf.mxu0 }
 0x16a   :  { %v212_v59 = vpop.f32.mrf.mxu1 }
 0x16b   :  { %v216_v60 = vmax.f32 %v212_v59, 0.0 }
 0x16c   :  { %v799_v61 = vpop.f32.mrf.mxu1 }
 0x16d   :  { %v217_v62 = vadd.f32 %v216_v60, %v145_v58 }
 0x16f   :  { %800 = vmatprep.subr.msk.mxu0 %vm231_vm3, %v217_v62 }
 0x170   :  { %801 = vmatpush3.msk.msra.mxu0 %vm231_vm3, %v217_v62 }
 0x171   :  { %803 = vmatmul.mubr.msk.f32.vlgmr.msra.gmra.mxu0 %vm218_vm2, %v31_v3  ;;  %819 = vmatprep.subr.mxu0 %v926_v16 }
 0x172   :  { %820 = vmatpush3.msra.mxu0 %v416_v56  ;;  %805 = vmatprep.mubr.msk.f32.mxu0 %vm218_vm2, %v32_v4 }
 0x173   :  { %821 = vmatprep.subr.mxu0 %v926_v16 }
 0x174   :  { %822 = vmatpush3.msra.mxu0 %v413_v63 }
 0x175   :  { %806 = vmatmul.mubr.msk.f32.gmra.mxu0 %vm218_vm2, %v33_v8  ;;  %823 = vmatprep.subr.mxu0 %v926_v16 }
 0x176   :  { %824 = vmatpush3.msra.mxu0 %v410_v9  ;;  %827 = vmatprep.mubr.msk.f32.mxu0 %vm927_vm0, %v926_v16  ;;  %v483_v13 = vpop.f32.mrf.mxu1 }
 0x177   :  { %825 = vmatprep.subr.mxu0 %v926_v16  ;;  %v487_v32 = vmax.f32 %v483_v13, 0.0 }
 0x178   :  { %826 = vmatpush3.msra.mxu0 %v407_v12  ;;  %v818_v14 = vpop.f32.mrf.mxu1 }
 0x179   :  { %828 = vmatmul.mubr.msk.f32.vlgmr.msra.gmra.mxu0 %vm71_vm1, %v1032_v43 }
 0x231   :  { %v804_v20 = vpop.f32.mrf.mxu0 }
 0x232   :  { %v734_v24 = vmul.f32 -1.442695, %v804_v20 }
 0x233   :  { %v301_v25 = vpop.f32.mrf.mxu0 }
 0x234   :  { %847 = vpow2.f32 %v734_v24  ;;  %v733_v26 = vmul.f32 -1.442695, %v301_v25 }
 0x235   :  { %v807_v29 = vpop.f32.mrf.mxu0 }
 0x236   :  { %849 = vpow2.f32 %v733_v26  ;;  %v736_v30 = vmul.f32 -1.442695, %v807_v29 }
 0x237   :  { %v311_v31 = vpop.f32.mrf.mxu0 }
 0x238   :  { %851 = vpow2.f32 %v736_v30  ;;  %v735_v16 = vmul.f32 -1.442695, %v311_v31 }
 0x239   :  { %v554_v33 = vpop.f32.mrf.mxu0 }
 0x23a   :  { %853 = vpow2.f32 %v735_v16  ;;  %v558_v34 = vmax.f32 %v554_v33, 0.0 }
 0x23b   :  { %v829_v35 = vpop.f32.mrf.mxu0 }
 0x23c   :  { %v559_v36 = vadd.f32 %v558_v34, %v487_v32 }
 0x23e   :  { %830 = vmatprep.subr.msk.mxu1 %vm231_vm3, %v559_v36 }
 0x23f   :  { %831 = vmatpush3.msk.msra.mxu1 %vm231_vm3, %v559_v36 }
 0x240   :  { %833 = vmatmul.mubr.msk.f32.vlgmr.msra.gmra.mxu1 %vm218_vm2, %v31_v3 }
 0x241   :  { %v848_v37 = vpop.eup %847  ;;  %835 = vmatprep.mubr.msk.f32.mxu1 %vm218_vm2, %v32_v4 }
 0x242   :  { %v333_v38 = vadd.f32 1.0, %v848_v37 }
 0x243   :  { %v850_v39 = vpop.eup %849 }
 0x244   :  { %855 = vrcp.f32 %v333_v38  ;;  %v332_v40 = vadd.f32 1.0, %v850_v39  ;;  %836 = vmatmul.mubr.msk.f32.gmra.mxu1 %vm218_vm2, %v33_v8 }
 0x245   :  { %v852_v41 = vpop.eup %851 }
 0x246   :  { %857 = vrcp.f32 %v332_v40  ;;  %v335_v42 = vadd.f32 1.0, %v852_v41 }
 0x247   :  { %v854_v43 = vpop.eup %853 }
 0x248   :  { %859 = vrcp.f32 %v335_v42  ;;  %v334_v44 = vadd.f32 1.0, %v854_v43 }
 0x24a   :  { %861 = vrcp.f32 %v334_v44 }
 0x251   :  { %v856_v45 = vpop.eup %855 }
 0x252   :  { %351 = vperm.xlu1 %846, %v856_v45  }
 0x253   :  { %v858_v46 = vpop.eup %857 }
 0x254   :  { %346 = vperm.xlu0 %845, %v858_v46  }
 0x255   :  { %v860_v47 = vpop.eup %859 }
 0x256   :  { %361 = vperm.xlu1 %846, %v860_v47  }
 0x257   :  { %v862_v48 = vpop.eup %861 }
 0x25a   :  { %356 = vperm.xlu1 %846, %v862_v48  }
 0x2cd   :  { %v352_v49 = vpop.permute.xlu1 %351 }
 0x2ce   :  { %v366_v50 = vmul.f32 %v352_v49, %v968_v6  ;;  %v367_v51 = vmul.f32 %v352_v49, %v970_v7 }
 0x2cf   :  { %v347_v52 = vpop.permute.xlu0 %346 }
 0x2d0   :  { %374 = vst [vmem:[#allocation5 + $0x10] sm:$0xff] %v366_v50  ;;  %375 = vst [vmem:[#allocation5 + $0x18] sm:$0xff] %v367_v51  ;;  %v364_v53 = vmul.f32 %v347_v52, %v976_v10  ;;  %v365_v54 = vmul.f32 %v347_v52, %v978_v11 }
 0x2d1   :  { %v362_v55 = vpop.permute.xlu1 %361 }
 0x2d2   :  { %372 = vst [vmem:[#allocation5] sm:$0xff] %v364_v53  ;;  %373 = vst [vmem:[#allocation5 + $0x8] sm:$0xff] %v365_v54  ;;  %v370_v56 = vmul.f32 %v362_v55, %v956_v0  ;;  %v371_v57 = vmul.f32 %v362_v55, %v958_v1 }
 0x2d4   :  { %378 = vst [vmem:[#allocation5 + $0x30] sm:$0xff] %v370_v56  ;;  %379 = vst [vmem:[#allocation5 + $0x38] sm:$0xff] %v371_v57 }
 0x2d5   :  { %v357_v58 = vpop.permute.xlu1 %356 }
 0x2d6   :  { %v368_v6 = vmul.f32 %v357_v58, %v960_v2  ;;  %v369_v7 = vmul.f32 %v357_v58, %v966_v5 }
 0x2d8   :  { %376 = vst [vmem:[#allocation5 + $0x20] sm:$0xff] %v368_v6  ;;  %377 = vst [vmem:[#allocation5 + $0x28] sm:$0xff] %v369_v7 }
 0x300   :  { %v834_v59 = vpop.f32.mrf.mxu1 }
 0x301   :  { %v745_v10 = vmul.f32 -1.442695, %v834_v59 }
 0x302   :  { %v629_v60 = vpop.f32.mrf.mxu1 }
 0x303   :  { %863 = vpow2.f32 %v745_v10  ;;  %v744_v11 = vmul.f32 -1.442695, %v629_v60 }
 0x304   :  { %v837_v61 = vpop.f32.mrf.mxu1 }
 0x305   :  { %865 = vpow2.f32 %v744_v11  ;;  %v747_v0 = vmul.f32 -1.442695, %v837_v61 }
 0x306   :  { %v639_v62 = vpop.f32.mrf.mxu1 }
 0x307   :  { %v746_v63 = vmul.f32 -1.442695, %v639_v62 }
 0x309   :  { %867 = vpow2.f32 %v746_v63 }
 0x30a   :  { %869 = vpow2.f32 %v747_v0 }
 0x310   :  { %v864_v1 = vpop.eup %863 }
 0x311   :  { %v661_v3 = vadd.f32 1.0, %v864_v1 }
 0x312   :  { %v866_v4 = vpop.eup %865 }
 0x313   :  { %871 = vrcp.f32 %v661_v3  ;;  %v660_v2 = vadd.f32 1.0, %v866_v4 }
 0x315   :  { %873 = vrcp.f32 %v660_v2 }
 0x316   :  { %v868_v5 = vpop.eup %867 }
 0x317   :  { %v662_v8 = vadd.f32 1.0, %v868_v5  ;;  %v870_v9 = vpop.eup %869 }
 0x318   :  { %v663_v12 = vadd.f32 1.0, %v870_v9 }
 0x319   :  { %875 = vrcp.f32 %v662_v8 }
 0x31a   :  { %877 = vrcp.f32 %v663_v12 }
 0x320   :  { %v872_v13 = vpop.eup %871 }
 0x321   :  { %679 = vperm.xlu1 %846, %v872_v13  }
 0x322   :  { %v874_v14 = vpop.eup %873 }
 0x325   :  { %674 = vperm.xlu1 %846, %v874_v14  }
 0x326   :  { %v876_v15 = vpop.eup %875 }
 0x327   :  { %v878_v20 = vpop.eup %877 }
 0x329   :  { %684 = vperm.xlu1 %846, %v876_v15  }
 0x32d   :  { %689 = vperm.xlu1 %846, %v878_v20  }
 0x39c   :  { %v680_v24 = vpop.permute.xlu1 %679 }
 0x39d   :  { %v694_v25 = vmul.f32 %v680_v24, %v1004_v22  ;;  %v695_v26 = vmul.f32 %v680_v24, %v1006_v23 }
 0x39f   :  { %703 = vst [vmem:[#allocation5 + $0x50] sm:$0xff] %v694_v25  ;;  %704 = vst [vmem:[#allocation5 + $0x58] sm:$0xff] %v695_v26 }
 0x3a0   :  { %v675_v29 = vpop.permute.xlu1 %674 }
 0x3a1   :  { %v692_v30 = vmul.f32 %v675_v29, %v1014_v27  ;;  %v693_v31 = vmul.f32 %v675_v29, %v1016_v28 }
 0x3a3   :  { %701 = vst [vmem:[#allocation5 + $0x40] sm:$0xff] %v692_v30  ;;  %702 = vst [vmem:[#allocation5 + $0x48] sm:$0xff] %v693_v31 }
 0x3a4   :  { %v685_v16 = vpop.permute.xlu1 %684 }
 0x3a5   :  { %v696_v32 = vmul.f32 %v685_v16, %v998_v19  ;;  %v697_v33 = vmul.f32 %v685_v16, %v1002_v21 }
 0x3a7   :  { %705 = vst [vmem:[#allocation5 + $0x60] sm:$0xff] %v696_v32  ;;  %706 = vst [vmem:[#allocation5 + $0x68] sm:$0xff] %v697_v33 }
 0x3a8   :  { %v690_v22 = vpop.permute.xlu1 %689 }
 0x3a9   :  { %v698_v23 = vmul.f32 %v690_v22, %v994_v17  ;;  %v699_v34 = vmul.f32 %v690_v22, %v996_v18 }
 0x3ab   :  { %707 = vst [vmem:[#allocation5 + $0x70] sm:$0xff] %v698_v23  ;;  %708 = vst [vmem:[#allocation5 + $0x78] sm:$0xff] %v699_v34 }
 0x3ac   :  { %910 = shalt.err (!%p907_p9)
}
 0x3ad   :  { %720 = dma.vmem_to_hbm [thread:$0]  %s715_s27, 2048, %s1106_s3, [#allocation4], %s924_s15, %s924_s15, %s925_s16  }
 0x3ae   :  { %921 = dma.done.wait [#allocation4], 2048  }
 0x3af   :  { %922 = vsyncadd [#allocation4], 4294965248 }
 0x3b0   :  { %724 = vsyncpa [#allocation3], 1 }
 0x3b1   :  { %725 = vsyncpa [#allocation4], 1 }

</bundles_post_ra>
